<compile_context>
chip_gen: v7x
topology: tpu7x:2x2x1
jax: 0.10.0
libtpu: 0.0.40
codegen_flags: <defaults>
</compile_context>

<pallas_src>
import functools

import jax
import jax.numpy as jnp
from jax.experimental import pallas as pl
from jax.experimental.pallas import tpu as pltpu


_MAX_TILE_N = 512  # adjacency row-tile size once N gets large (multiple of 128)


def _round_up(x, m):
    return ((x + m - 1) // m) * m


def _choose_tiling(n):
    if n <= _MAX_TILE_N:
        n_pad = _round_up(max(n, 1), 128)   # lane-dense contraction dim
        return n_pad, n_pad                 # single tile, full residency
    n_pad = _round_up(n, _MAX_TILE_N)
    return n_pad, _MAX_TILE_N


def _pad_to(x, shape):
    pads = [(0, s - d) for d, s in zip(x.shape, shape)]
    return jnp.pad(x, pads)


def _vmem_limit_bytes(tile_n, n_pad, f_pad, g_pad):
    # double-buffered input blocks + scratch + resident output, with 2x headroom.
    a_blk = tile_n * n_pad * 2               # bf16 adjacency tile
    p_blk = g_pad * tile_n * 4               # f32 pool tile
    x_blk = n_pad * f_pad * 4                # f32 node features
    w_blk = f_pad * f_pad * 4 + f_pad * 4    # weights + bias
    scratch = n_pad * f_pad * (2 + 4)        # xw (bf16) + h (f32)
    out = g_pad * f_pad * 4
    need = 2 * (a_blk + p_blk + x_blk + w_blk) + scratch + 2 * out
    return int(min(max(2 * need, 16 * 1024 * 1024), 64 * 1024 * 1024))


def gcn_twin_kernel(a_ref, x_ref, p_ref, w_ref, b_ref, g_ref, xw_ref, h_ref):
    """grid = (branch, layer, row_tile); branch axis is 'parallel'."""
    l = pl.program_id(1)          # GCN layer index: 0, 1, 2
    t = pl.program_id(2)          # adjacency row-tile index
    tile_n = a_ref.shape[0]

    # Once per (branch, layer): XW for all nodes, cached in VMEM scratch.
    # Stored as bf16 so the big A_hat @ XW matmuls take the bf16 MXU path.
    # h_ref may be safely overwritten afterwards (its product with W is captured).
    @pl.when(t == 0)
    def _compute_xw():
        w = w_ref[...]

        @pl.when(l == 0)
        def _():
            xw_ref[...] = jnp.dot(
                x_ref[...], w, preferred_element_type=jnp.float32
            ).astype(xw_ref.dtype)

        @pl.when(l > 0)
        def _():
            xw_ref[...] = jnp.dot(
                h_ref[...], w, preferred_element_type=jnp.float32
            ).astype(xw_ref.dtype)

    # Rows [t*tile_n, (t+1)*tile_n) of  A_hat @ XW + b  (f32 accumulation).
    z = jnp.dot(a_ref[...], xw_ref[...],
                preferred_element_type=jnp.float32) + b_ref[...]

    row0 = pl.multiple_of(t * tile_n, tile_n)

    @pl.when(l < 2)
    def _store_h():                                # conv1/conv2 + ReLU
        h_ref[pl.ds(row0, tile_n), :] = jnp.maximum(z, 0.0)

    @pl.when(l == 2)
    def _pool():                                   # conv3 + global_mean_pool
        @pl.when(t == 0)
        def _init():
            g_ref[...] = jnp.zeros_like(g_ref)
        g_ref[...] += jnp.dot(p_ref[...], z, preferred_element_type=jnp.float32)


def dense_normalized_adj(edge_index, num_nodes):
    """Dense D^-1/2 (A + I) D^-1/2 matching torch_geometric GCNConv defaults
    (add_remaining_self_loops: only add a self loop where none exists)."""
    src, dst = edge_index[0], edge_index[1]
    a = jnp.zeros((num_nodes, num_nodes), jnp.float32)
    a = a.at[dst, src].add(1.0)                 # message src -> dst (row = target)
    has_self = jnp.diagonal(a) > 0
    a = a + jnp.diag(jnp.where(has_self, 0.0, 1.0))
    deg = jnp.sum(a, axis=1)
    dinv = jnp.where(deg > 0, jax.lax.rsqrt(deg), 0.0)
    return a * dinv[:, None] * dinv[None, :]


def mean_pool_matrix(batch, num_graphs):
    onehot = (batch[None, :] == jnp.arange(num_graphs)[:, None]).astype(jnp.float32)
    counts = jnp.maximum(jnp.sum(onehot, axis=1, keepdims=True), 1.0)
    return onehot / counts                       # [G, N]


@functools.partial(jax.jit, static_argnames=("num_graphs",))
def gcn_twin_forward(params, x0, edge_attr0, edge_index0,
                     x1, edge_attr1, edge_index1,
                     batch0, batch1, *, num_graphs):
    # edge_attr0 / edge_attr1 are unused by the reference forward.
    del edge_attr0, edge_attr1
    n0, f = x0.shape
    n1, _ = x1.shape
    g = num_graphs

    f_pad = _round_up(max(f, 1), 128)     # lane-dense feature dim
    g_pad = _round_up(max(g, 1), 8)       # sublane-dense graph dim
    n_pad, tile_n = _choose_tiling(max(n0, n1))
    num_tiles = n_pad // tile_n

    a0 = dense_normalized_adj(edge_index0, n0)
    a1 = dense_normalized_adj(edge_index1, n1)
    p0 = mean_pool_matrix(batch0, g)
    p1 = mean_pool_matrix(batch1, g)

    # Stack twin branches along a leading axis; zero-padding of A/P/X/W rows and
    # columns is inert (padded nodes / features never contribute to real rows,
    # real feature columns, or pooling).
    a_st = jnp.stack([_pad_to(a0, (n_pad, n_pad)),
                      _pad_to(a1, (n_pad, n_pad))]).astype(jnp.bfloat16)
    p_st = jnp.stack([_pad_to(p0, (g_pad, n_pad)),
                      _pad_to(p1, (g_pad, n_pad))]).astype(jnp.float32)
    x_st = jnp.stack([_pad_to(x0, (n_pad, f_pad)),
                      _pad_to(x1, (n_pad, f_pad))]).astype(jnp.float32)

    w_st = jnp.stack([_pad_to(params["w1"], (f_pad, f_pad)),
                      _pad_to(params["w2"], (f_pad, f_pad)),
                      _pad_to(params["w3"], (f_pad, f_pad))])   # [3, Fp, Fp]
    b_st = jnp.stack([_pad_to(params["b1"], (1, f_pad)),
                      _pad_to(params["b2"], (1, f_pad)),
                      _pad_to(params["b3"], (1, f_pad))])       # [3, 1, Fp]

    pooled = pl.pallas_call(
        gcn_twin_kernel,
        out_shape=jax.ShapeDtypeStruct((2, g_pad, f_pad), jnp.float32),
        grid=(2, 3, num_tiles),
        in_specs=[
            pl.BlockSpec((None, tile_n, n_pad), lambda b, l, t: (b, t, 0)),   # A_hat
            pl.BlockSpec((None, n_pad, f_pad),  lambda b, l, t: (b, 0, 0)),   # X
            pl.BlockSpec((None, g_pad, tile_n), lambda b, l, t: (b, 0, t)),   # P
            pl.BlockSpec((None, f_pad, f_pad),  lambda b, l, t: (l, 0, 0)),   # W_l
            pl.BlockSpec((None, 1, f_pad),      lambda b, l, t: (l, 0, 0)),   # b_l
        ],
        out_specs=pl.BlockSpec((None, g_pad, f_pad), lambda b, l, t: (b, 0, 0)),
        scratch_shapes=[
            pltpu.VMEM((n_pad, f_pad), jnp.bfloat16),   # XW of the current layer
            pltpu.VMEM((n_pad, f_pad), jnp.float32),    # resident hidden state h
        ],
        compiler_params=pltpu.CompilerParams(
            dimension_semantics=("parallel", "arbitrary", "arbitrary"),
            vmem_limit_bytes=_vmem_limit_bytes(tile_n, n_pad, f_pad, g_pad),
        ),
    )(a_st, x_st, p_st, w_st, b_st)

    # x = cat([g0, g1], dim=1); dropout(p=0.5, training=False) == identity;
    # final tiny Linear(2F -> 2) in plain XLA (lane-sparse output kept out of
    # the kernel).  NOTE: params["wl"] is stored (2F, out) = torch weight.T.
    cat = jnp.concatenate([pooled[0, :g, :f], pooled[1, :g, :f]], axis=-1)   # [G, 2F]
    return cat @ params["wl"] + params["bl"]                                 # [G, 2]


def init_params(key, num_node_features):
    # Deterministic synthetic init (shapes match the torch module):
    #   conv{1,2,3}: GCNConv(F, F) -> weight (F, F) + bias (F,)
    #   L1: Linear(2F, 2)          -> weight stored transposed as (2F, 2) + bias (2,)
    f = num_node_features
    keys = jax.random.split(key, 8)
    scale = 1.0 / jnp.sqrt(jnp.float32(f))
    lscale = 1.0 / jnp.sqrt(2.0 * f)
    return {
        "w1": jax.random.uniform(keys[0], (f, f), jnp.float32, -scale, scale),
        "b1": jax.random.uniform(keys[1], (1, f), jnp.float32, -scale, scale),
        "w2": jax.random.uniform(keys[2], (f, f), jnp.float32, -scale, scale),
        "b2": jax.random.uniform(keys[3], (1, f), jnp.float32, -scale, scale),
        "w3": jax.random.uniform(keys[4], (f, f), jnp.float32, -scale, scale),
        "b3": jax.random.uniform(keys[5], (1, f), jnp.float32, -scale, scale),
        "wl": jax.random.uniform(keys[6], (2 * f, 2), jnp.float32, -lscale, lscale),
        "bl": jax.random.uniform(keys[7], (1, 2), jnp.float32, -lscale, lscale),
    }


if __name__ == "__main__":
    key = jax.random.PRNGKey(0)

    NUM_FEATURES = 8      # num_node_features
    NUM_NODES = 16        # nodes per twin input (two graphs batched together)
    NUM_GRAPHS = 2

    params = init_params(key, NUM_FEATURES)

    kx0, kx1, _ = jax.random.split(jax.random.PRNGKey(1), 3)
    x0 = jax.random.normal(kx0, (NUM_NODES, NUM_FEATURES), jnp.float32)
    x1 = jax.random.normal(kx1, (NUM_NODES, NUM_FEATURES), jnp.float32)

    # Undirected ring edges within each of the two graphs (nodes 0..7 belong to
    # graph 0, nodes 8..15 to graph 1), stored as [2, E].
    def ring_edges(start, n):
        s = jnp.arange(start, start + n)
        d = jnp.concatenate([s[1:], s[:1]])
        return jnp.stack([jnp.concatenate([s, d]), jnp.concatenate([d, s])])

    half = NUM_NODES // 2
    edge_index0 = jnp.concatenate(
        [ring_edges(0, half), ring_edges(half, half)], axis=1).astype(jnp.int32)
    edge_index1 = jnp.concatenate(
        [ring_edges(0, half), ring_edges(half, half)], axis=1).astype(jnp.int32)

    num_edges = edge_index0.shape[1]
    edge_attr0 = jnp.ones((num_edges, 1), jnp.float32)   # unused by forward
    edge_attr1 = jnp.ones((num_edges, 1), jnp.float32)   # unused by forward

    batch0 = jnp.concatenate(
        [jnp.zeros((half,), jnp.int32), jnp.ones((half,), jnp.int32)])
    batch1 = jnp.concatenate(
        [jnp.zeros((half,), jnp.int32), jnp.ones((half,), jnp.int32)])

    out = gcn_twin_forward(params, x0, edge_attr0, edge_index0,
                           x1, edge_attr1, edge_index1,
                           batch0, batch1, num_graphs=NUM_GRAPHS)
    out = jax.block_until_ready(out)
    assert out.shape == (NUM_GRAPHS, 2)
    print("KERNEL_OK")
</pallas_src>

<mosaic_0001>
module attributes {stable_mosaic.version = 11 : i64} {
  func.func private @main(%arg0: i32) attributes {dimension_semantics = [#tpu.dimension_semantics<core_parallel>], iteration_bounds = array<i64: 2>, tpu.core_type = #tpu.core_type<sc_scalar_subcore>, window_params = []} {
    return
  }
}

module attributes {stable_mosaic.version = 11 : i64} {
  func.func private @main(%arg0: i32) attributes {dimension_semantics = [#tpu.dimension_semantics<core_parallel>], iteration_bounds = array<i64: 2>, tpu.core_type = #tpu.core_type<sc_scalar_subcore>, window_params = []} {
    return
  }
}

module attributes {stable_mosaic.version = 11 : i64} {
  func.func @gcn_twin_kernel(%arg0: i32, %arg1: i32, %arg2: i32, %arg3: memref<1x128x128xbf16, #tpu.memory_space<vmem>>, %arg4: memref<1x128x128xf32, #tpu.memory_space<vmem>>, %arg5: memref<1x8x128xf32, #tpu.memory_space<vmem>>, %arg6: memref<1x128x128xf32, #tpu.memory_space<vmem>>, %arg7: memref<1x1x128xf32, #tpu.memory_space<vmem>>, %arg8: memref<1x8x128xf32, #tpu.memory_space<vmem>>, %arg9: memref<128x128xbf16, #tpu.memory_space<vmem>>, %arg10: memref<128x128xf32, #tpu.memory_space<vmem>>) attributes {dimension_semantics = [#tpu.dimension_semantics<parallel>, #tpu.dimension_semantics<arbitrary>, #tpu.dimension_semantics<arbitrary>], iteration_bounds = array<i64: 2, 3, 1>, scalar_prefetch = 0 : i64, scratch_operands = 2 : i64, tpu.core_type = #tpu.core_type<tc>, window_params = [{transform_indices = @transform_0, window_bounds = array<i64: 1, 128, 128>}, {transform_indices = @transform_1, window_bounds = array<i64: 1, 128, 128>}, {transform_indices = @transform_2, window_bounds = array<i64: 1, 8, 128>}, {transform_indices = @transform_3, window_bounds = array<i64: 1, 128, 128>}, {transform_indices = @transform_4, window_bounds = array<i64: 1, 1, 128>}, {transform_indices = @transform_5, window_bounds = array<i64: 1, 8, 128>}]} {
    %c0_i32 = arith.constant 0 : i32
    %0 = arith.cmpi eq, %arg2, %c0_i32 : i32
    %1 = arith.extui %0 : i1 to i32
    %c0_i32_0 = arith.constant 0 : i32
    %2 = arith.cmpi ne, %1, %c0_i32_0 : i32
    scf.if %2 {
      %c0_11 = arith.constant 0 : index
      %c0_12 = arith.constant 0 : index
      %c0_13 = arith.constant 0 : index
      %19 = vector.load %arg6[%c0_11, %c0_12, %c0_13] : memref<1x128x128xf32, #tpu.memory_space<vmem>>, vector<1x128x128xf32>
      %20 = vector.shape_cast %19 : vector<1x128x128xf32> to vector<128x128xf32>
      %c0_i32_14 = arith.constant 0 : i32
      %21 = arith.cmpi eq, %arg1, %c0_i32_14 : i32
      %22 = arith.extui %21 : i1 to i32
      %c0_i32_15 = arith.constant 0 : i32
      %23 = arith.cmpi ne, %22, %c0_i32_15 : i32
      scf.if %23 {
        %c0_18 = arith.constant 0 : index
        %c0_19 = arith.constant 0 : index
        %c0_20 = arith.constant 0 : index
        %27 = vector.load %arg4[%c0_18, %c0_19, %c0_20] : memref<1x128x128xf32, #tpu.memory_space<vmem>>, vector<1x128x128xf32>
        %28 = vector.shape_cast %27 : vector<1x128x128xf32> to vector<128x128xf32>
        %cst_21 = arith.constant dense<0.000000e+00> : vector<128x128xf32>
        %29 = tpu.matmul %28, %20, %cst_21 {dimension_numbers = #tpu.dot_dimension_numbers<[1], [0], [0], [1], [0, 0, 1, 1], [], []>} : vector<128x128xf32>, vector<128x128xf32>, vector<128x128xf32> -> vector<128x128xf32>
        %30 = arith.truncf %29 : vector<128x128xf32> to vector<128x128xbf16>
        %c0_22 = arith.constant 0 : index
        %c0_23 = arith.constant 0 : index
        %31 = vector.load %arg9[%c0_22, %c0_23] : memref<128x128xbf16, #tpu.memory_space<vmem>>, vector<128x128xbf16>
        tpu.vector_store %arg9[%c0_22, %c0_23], %30 {strides = array<i32>} : memref<128x128xbf16, #tpu.memory_space<vmem>>, vector<128x128xbf16>,
      } else {
      }
      %c0_i32_16 = arith.constant 0 : i32
      %24 = arith.cmpi sgt, %arg1, %c0_i32_16 : i32
      %25 = arith.extui %24 : i1 to i32
      %c0_i32_17 = arith.constant 0 : i32
      %26 = arith.cmpi ne, %25, %c0_i32_17 : i32
      scf.if %26 {
        %c0_18 = arith.constant 0 : index
        %c0_19 = arith.constant 0 : index
        %27 = vector.load %arg10[%c0_18, %c0_19] : memref<128x128xf32, #tpu.memory_space<vmem>>, vector<128x128xf32>
        %cst_20 = arith.constant dense<0.000000e+00> : vector<128x128xf32>
        %28 = tpu.matmul %27, %20, %cst_20 {dimension_numbers = #tpu.dot_dimension_numbers<[1], [0], [0], [1], [0, 0, 1, 1], [], []>} : vector<128x128xf32>, vector<128x128xf32>, vector<128x128xf32> -> vector<128x128xf32>
        %29 = arith.truncf %28 : vector<128x128xf32> to vector<128x128xbf16>
        %c0_21 = arith.constant 0 : index
        %c0_22 = arith.constant 0 : index
        %30 = vector.load %arg9[%c0_21, %c0_22] : memref<128x128xbf16, #tpu.memory_space<vmem>>, vector<128x128xbf16>
        tpu.vector_store %arg9[%c0_21, %c0_22], %29 {strides = array<i32>} : memref<128x128xbf16, #tpu.memory_space<vmem>>, vector<128x128xbf16>,
      } else {
      }
    } else {
    }
    %c0 = arith.constant 0 : index
    %c0_1 = arith.constant 0 : index
    %c0_2 = arith.constant 0 : index
    %3 = vector.load %arg3[%c0, %c0_1, %c0_2] : memref<1x128x128xbf16, #tpu.memory_space<vmem>>, vector<1x128x128xbf16>
    %4 = vector.shape_cast %3 : vector<1x128x128xbf16> to vector<128x128xbf16>
    %c0_3 = arith.constant 0 : index
    %c0_4 = arith.constant 0 : index
    %5 = vector.load %arg9[%c0_3, %c0_4] : memref<128x128xbf16, #tpu.memory_space<vmem>>, vector<128x128xbf16>
    %cst = arith.constant dense<0.000000e+00> : vector<128x128xf32>
    %6 = tpu.matmul %4, %5, %cst {dimension_numbers = #tpu.dot_dimension_numbers<[1], [0], [0], [1], [0, 0, 1, 1], [], []>} : vector<128x128xbf16>, vector<128x128xbf16>, vector<128x128xf32> -> vector<128x128xf32>
    %c0_5 = arith.constant 0 : index
    %c0_6 = arith.constant 0 : index
    %c0_7 = arith.constant 0 : index
    %7 = vector.load %arg7[%c0_5, %c0_6, %c0_7] : memref<1x1x128xf32, #tpu.memory_space<vmem>>, vector<1x1x128xf32>
    %8 = vector.shape_cast %7 : vector<1x1x128xf32> to vector<1x128xf32>
    %9 = vector.broadcast %8 : vector<1x128xf32> to vector<128x128xf32>
    %10 = arith.addf %6, %9 : vector<128x128xf32>
    %c128_i32 = arith.constant 128 : i32
    %11 = arith.muli %arg2, %c128_i32 : i32
    %12 = tpu.assume_multiple %11, 128 : i32
    %c2_i32 = arith.constant 2 : i32
    %13 = arith.cmpi slt, %arg1, %c2_i32 : i32
    %14 = arith.extui %13 : i1 to i32
    %c0_i32_8 = arith.constant 0 : i32
    %15 = arith.cmpi ne, %14, %c0_i32_8 : i32
    scf.if %15 {
      %cst_11 = arith.constant 0.000000e+00 : f32
      %19 = vector.broadcast %cst_11 : f32 to vector<128x128xf32>
      %20 = arith.maximumf %10, %19 : vector<128x128xf32>
      %21 = arith.index_cast %12 : i32 to index
      %c0_12 = arith.constant 0 : index
      %22 = vector.load %arg10[%21, %c0_12] : memref<128x128xf32, #tpu.memory_space<vmem>>, vector<128x128xf32>
      tpu.vector_store %arg10[%21, %c0_12], %20 {strides = array<i32>} : memref<128x128xf32, #tpu.memory_space<vmem>>, vector<128x128xf32>,
    } else {
    }
    %c2_i32_9 = arith.constant 2 : i32
    %16 = arith.cmpi eq, %arg1, %c2_i32_9 : i32
    %17 = arith.extui %16 : i1 to i32
    %c0_i32_10 = arith.constant 0 : i32
    %18 = arith.cmpi ne, %17, %c0_i32_10 : i32
    scf.if %18 {
      %c0_i32_11 = arith.constant 0 : i32
      %19 = arith.cmpi eq, %arg2, %c0_i32_11 : i32
      %20 = arith.extui %19 : i1 to i32
      %c0_i32_12 = arith.constant 0 : i32
      %21 = arith.cmpi ne, %20, %c0_i32_12 : i32
      scf.if %21 {
        %cst_23 = arith.constant 0.000000e+00 : f32
        %31 = vector.broadcast %cst_23 : f32 to vector<8x128xf32>
        %c0_24 = arith.constant 0 : index
        %c0_25 = arith.constant 0 : index
        %c0_26 = arith.constant 0 : index
        %32 = vector.load %arg8[%c0_24, %c0_25, %c0_26] : memref<1x8x128xf32, #tpu.memory_space<vmem>>, vector<1x8x128xf32>
        %33 = vector.shape_cast %32 : vector<1x8x128xf32> to vector<8x128xf32>
        %34 = vector.shape_cast %31 : vector<8x128xf32> to vector<1x8x128xf32>
        tpu.vector_store %arg8[%c0_24, %c0_25, %c0_26], %34 {strides = array<i32>} : memref<1x8x128xf32, #tpu.memory_space<vmem>>, vector<1x8x128xf32>,
      } else {
      }
      %c0_13 = arith.constant 0 : index
      %c0_14 = arith.constant 0 : index
      %c0_15 = arith.constant 0 : index
      %22 = vector.load %arg8[%c0_13, %c0_14, %c0_15] : memref<1x8x128xf32, #tpu.memory_space<vmem>>, vector<1x8x128xf32>
      %23 = vector.shape_cast %22 : vector<1x8x128xf32> to vector<8x128xf32>
      %c0_16 = arith.constant 0 : index
      %c0_17 = arith.constant 0 : index
      %c0_18 = arith.constant 0 : index
      %24 = vector.load %arg5[%c0_16, %c0_17, %c0_18] : memref<1x8x128xf32, #tpu.memory_space<vmem>>, vector<1x8x128xf32>
      %25 = vector.shape_cast %24 : vector<1x8x128xf32> to vector<8x128xf32>
      %cst_19 = arith.constant dense<0.000000e+00> : vector<8x128xf32>
      %26 = tpu.matmul %25, %10, %cst_19 {dimension_numbers = #tpu.dot_dimension_numbers<[1], [0], [0], [1], [0, 0, 1, 1], [], []>} : vector<8x128xf32>, vector<128x128xf32>, vector<8x128xf32> -> vector<8x128xf32>
      %27 = arith.addf %23, %26 : vector<8x128xf32>
      %c0_20 = arith.constant 0 : index
      %c0_21 = arith.constant 0 : index
      %c0_22 = arith.constant 0 : index
      %28 = vector.load %arg8[%c0_20, %c0_21, %c0_22] : memref<1x8x128xf32, #tpu.memory_space<vmem>>, vector<1x8x128xf32>
      %29 = vector.shape_cast %28 : vector<1x8x128xf32> to vector<8x128xf32>
      %30 = vector.shape_cast %27 : vector<8x128xf32> to vector<1x8x128xf32>
      tpu.vector_store %arg8[%c0_20, %c0_21, %c0_22], %30 {strides = array<i32>} : memref<1x8x128xf32, #tpu.memory_space<vmem>>, vector<1x8x128xf32>,
    } else {
    }
    return
  }
  func.func @transform_0(%arg0: i32, %arg1: i32, %arg2: i32) -> (i32, i32, i32) {
    %c0_i32 = arith.constant 0 : i32
    %c0_i32_0 = arith.constant 0 : i32
    return %arg0, %arg2, %c0_i32 : i32, i32, i32
  }
  func.func @transform_1(%arg0: i32, %arg1: i32, %arg2: i32) -> (i32, i32, i32) {
    %c0_i32 = arith.constant 0 : i32
    %c0_i32_0 = arith.constant 0 : i32
    %c0_i32_1 = arith.constant 0 : i32
    return %arg0, %c0_i32, %c0_i32_0 : i32, i32, i32
  }
  func.func @transform_2(%arg0: i32, %arg1: i32, %arg2: i32) -> (i32, i32, i32) {
    %c0_i32 = arith.constant 0 : i32
    %c0_i32_0 = arith.constant 0 : i32
    return %arg0, %c0_i32, %arg2 : i32, i32, i32
  }
  func.func @transform_3(%arg0: i32, %arg1: i32, %arg2: i32) -> (i32, i32, i32) {
    %c0_i32 = arith.constant 0 : i32
    %c0_i32_0 = arith.constant 0 : i32
    %c0_i32_1 = arith.constant 0 : i32
    return %arg1, %c0_i32, %c0_i32_0 : i32, i32, i32
  }
  func.func @transform_4(%arg0: i32, %arg1: i32, %arg2: i32) -> (i32, i32, i32) {
    %c0_i32 = arith.constant 0 : i32
    %c0_i32_0 = arith.constant 0 : i32
    %c0_i32_1 = arith.constant 0 : i32
    return %arg1, %c0_i32, %c0_i32_0 : i32, i32, i32
  }
  func.func @transform_5(%arg0: i32, %arg1: i32, %arg2: i32) -> (i32, i32, i32) {
    %c0_i32 = arith.constant 0 : i32
    %c0_i32_0 = arith.constant 0 : i32
    %c0_i32_1 = arith.constant 0 : i32
    return %arg0, %c0_i32, %c0_i32_0 : i32, i32, i32
  }
}

</mosaic_0001>

<bundles_post_ra>
// kernel: gcn_twin_forward.1
= control target key start
LH: loop header
LB: loop body
LE: loop exit
PB: predicated region body
PF: predicated region fallthrough
CT: control target
= control target key end

     0   :  { %s1709_s18 = smov 0   ;;  %s1711_s19 = smov 0   ;;  %s1931_s0 = inlined_call_operand.vmem [shape: bf16[2,128,128], index: 0, kind: input, shape index: {}]   ;;  %s1932_s1 = inlined_call_operand.vmem [shape: f32[2,128,128], index: 1, kind: input, shape index: {}]   ;;  %s1933_s2 = inlined_call_operand.vmem [shape: f32[2,8,128], index: 2, kind: input, shape index: {}]   ;;  %s1934_s3 = inlined_call_operand.vmem [shape: f32[3,128,128], index: 3, kind: input, shape index: {}]   ;;  %s1935_s4 = inlined_call_operand.vmem [shape: f32[3,1,128], index: 4, kind: input, shape index: {}]   ;;  %s1936_s5 = inlined_call_operand.vmem [shape: f32[2,8,128], index: 5, kind: output, shape index: {}]  }
   0x1   :  { %1937 = sst [smem:[#allocation4_spill]] %s1931_s0  ;;  %s1713_s20 = smov 0  }
   0x2   :  { %s1715_s21 = smov 0   ;;  %s1717_s22 = smov 0  }
   0x3 LB: > { %s30_s23 = sadd.s32 1, %s1666_s20  ;;  %s34_s24 = sadd.s32 1, %s1670_s21  ;;  %s1674_s22 = sphi %s1717_s22, %s15_s22   ;;  %s1670_s21 = sphi %s1715_s21, %s1942_s21   ;;  %s1666_s20 = sphi %s1713_s20, %s1941_s20   ;;  %s1662_s19 = sphi %s1711_s19, %s1940_s19   ;;  %s1658_s18 = sphi %s1709_s18, %s1939_s18  }
   0x4   : > { %p32_p0 = scmp.ge.s32.totalorder %s30_s23, 3  ;;  %p1146_p1 = scmp.ge.s32.totalorder %s1674_s22, 1 }
   0x5   : > { %p255_p2 = scmp.lt.s32.totalorder %s1674_s22, 7 }
   0x6   : > { %s1944_s23 = smov (%p32_p0, %s30_s23), 0  ;;  %s1946_s24 = smov (!%p32_p0, %s34_s24), %s1670_s21 }
   0x7   : > { %p256_p3 = pnand %p1146_p1, %p255_p2  ;;  %p36_p4 = scmp.ge.s32.totalorder %s1946_s24, 2 }
   0x8   : > { %p307_p5 = scmp.lt.s32.totalorder (!%p256_p3), %s1662_s19, 1  ;;  %p328_p6 = scmp.lt.s32.totalorder (!%p256_p3), %s1658_s18, 2 }
   0x9   : > { %s1948_s24 = smov (%p36_p4, %s1946_s24), 0  ;;  %259 = sbr.rel (%p256_p3) target bundleno = 1056 (0x420), region = 40 }
   0xa   : > { %s1938_s0 = sld [smem:[#allocation4_spill]] (!%p256_p3)  ;;  %p1155_p7 = scmp.ne.s32.totalorder (!%p256_p3), %s1658_s18, 0 }
  0x10   : > { %s1950_s19 = smov (!%p307_p5, %s1662_s19), 1 }
  0x11   : > { %s1743_s25 = scalar_select %p328_p6, %s1658_s18, 2 }
  0x12   : > { %s1170_s26 = sshll.u32 %s1950_s19, 6  ;;  %s1171_s27 = sshll.u32 %s1950_s19, 7 }
  0x13   : > { %s1748_s30 = scalar_lea.vmem %s1938_s0, %s1170_s26  ;;  %s1753_s8 = scalar_lea.vmem %s1932_s1, %s1171_s27 }
  0x14   : > { %s1151_s9 = sshll.u32 %s1950_s19, 3  ;;  %s1172_s10 = sshll.u32 %s1743_s25, 7  ;;  %v365_v18 = vld [vmem:[%s1753_s8] sm:$0xff] (!%p1155_p7)  ;;  %v366_v26 = vld [vmem:[%s1753_s8 + $0x8] sm:$0xff] (!%p1155_p7)  ;;  %v367_v28 = vld [vmem:[%s1753_s8 + $0x10] sm:$0xff] (!%p1155_p7) }
  0x15   : > { %s1759_s13 = scalar_lea.vmem %s1933_s2, %s1151_s9  ;;  %s332_s16 = scalar_lea.vmem %s1934_s3, %s1172_s10  ;;  %1302 = vmatprep.mubr.f32.mxu0 (!%p1155_p7), %v365_v18  ;;  %v373_v19 = vld [vmem:[%s1753_s8 + $0x40] sm:$0xff] (!%p1155_p7)  ;;  %v374_v27 = vld [vmem:[%s1753_s8 + $0x48] sm:$0xff] (!%p1155_p7)  ;;  %v375_v29 = vld [vmem:[%s1753_s8 + $0x50] sm:$0xff] (!%p1155_p7) }
  0x16   : > { %s335_s26 = scalar_lea.vmem %s1935_s4, %s1743_s25  ;;  %s1771_s27 = scalar_lea.vmem %s1936_s5, %s1151_s9  ;;  %v1773_v0 = vld [vmem:[%s332_s16] sm:$0xff]  ;;  %v1775_v1 = vld [vmem:[%s332_s16 + $0x8] sm:$0xff]  ;;  %v1777_v2 = vld [vmem:[%s332_s16 + $0x10] sm:$0xff]  ;;  %1314 = vmatprep.mubr.f32.mxu1 (!%p1155_p7), %v373_v19 }
  0x17   : > { %v1779_v3 = vld [vmem:[%s332_s16 + $0x18] sm:$0xff]  ;;  %v1781_v4 = vld [vmem:[%s332_s16 + $0x20] sm:$0xff]  ;;  %v1783_v5 = vld [vmem:[%s332_s16 + $0x28] sm:$0xff]  ;;  %364 = sbr.rel (%p1155_p7) target bundleno = 285 (0x11d), region = 48  ;;  %v1449_v16 = vpack.c.bf16 (!%p1155_p7), %v1775_v1, %v1773_v0 }
  0x18   : > { %v1785_v6 = vld [vmem:[%s332_s16 + $0x30] sm:$0xff]  ;;  %v1787_v7 = vld [vmem:[%s332_s16 + $0x38] sm:$0xff]  ;;  %v1789_v8 = vld [vmem:[%s332_s16 + $0x40] sm:$0xff]  ;;  %v1453_v17 = vpack.c.bf16 (!%p1155_p7), %v1779_v3, %v1777_v2  ;;  %v1457_v20 = vpack.c.bf16 (!%p1155_p7), %v1783_v5, %v1781_v4 }
  0x19   : > { %v1791_v9 = vld [vmem:[%s332_s16 + $0x48] sm:$0xff]  ;;  %v1793_v10 = vld [vmem:[%s332_s16 + $0x50] sm:$0xff]  ;;  %v1795_v11 = vld [vmem:[%s332_s16 + $0x58] sm:$0xff]  ;;  %1450 = vmatprep.subr.bf16.mxu0 (!%p1155_p7), %v1449_v16  ;;  %1537 = vmatprep.subr.bf16.mxu1 (!%p1155_p7), %v1449_v16  ;;  %v1461_v21 = vpack.c.bf16 (!%p1155_p7), %v1787_v7, %v1785_v6 }
  0x1a   : > { %v1797_v12 = vld [vmem:[%s332_s16 + $0x60] sm:$0xff]  ;;  %v1799_v13 = vld [vmem:[%s332_s16 + $0x68] sm:$0xff]  ;;  %v1801_v14 = vld [vmem:[%s332_s16 + $0x70] sm:$0xff]  ;;  %1452 = vmatpush3.bf16.msra.mxu0 (!%p1155_p7), %v1449_v16  ;;  %1545 = vmatpush3.bf16.msra.mxu1 (!%p1155_p7), %v1449_v16  ;;  %v1465_v22 = vpack.c.bf16 (!%p1155_p7), %v1791_v9, %v1789_v8  ;;  %v1469_v23 = vpack.c.bf16 (!%p1155_p7), %v1795_v11, %v1793_v10 }
  0x1b   : > { %v1803_v15 = vld [vmem:[%s332_s16 + $0x78] sm:$0xff]  ;;  %1454 = vmatprep.subr.bf16.mxu0 (!%p1155_p7), %v1453_v17  ;;  %1538 = vmatprep.subr.bf16.mxu1 (!%p1155_p7), %v1453_v17  ;;  %v1473_v24 = vpack.c.bf16 (!%p1155_p7), %v1799_v13, %v1797_v12  ;;  %v369_v32 = vld [vmem:[%s1753_s8 + $0x20] sm:$0xff] (!%p1155_p7)  ;;  %v370_v34 = vld [vmem:[%s1753_s8 + $0x28] sm:$0xff] (!%p1155_p7) }
  0x1c   : > { %v1477_v25 = vpack.c.bf16 (!%p1155_p7), %v1803_v15, %v1801_v14  ;;  %v368_v30 = vld [vmem:[%s1753_s8 + $0x18] sm:$0xff] (!%p1155_p7)  ;;  %v377_v33 = vld [vmem:[%s1753_s8 + $0x60] sm:$0xff] (!%p1155_p7)  ;;  %v378_v35 = vld [vmem:[%s1753_s8 + $0x68] sm:$0xff] (!%p1155_p7) }
  0x1d   : > { %v376_v31 = vld [vmem:[%s1753_s8 + $0x58] sm:$0xff] (!%p1155_p7)  ;;  %v371_v36 = vld [vmem:[%s1753_s8 + $0x30] sm:$0xff] (!%p1155_p7) }
  0x1e   : > { %1456 = vmatpush3.bf16.msra.mxu0 %v1453_v17  ;;  %1546 = vmatpush3.bf16.msra.mxu1 %v1453_v17  ;;  %v379_v37 = vld [vmem:[%s1753_s8 + $0x70] sm:$0xff]  ;;  %v372_v38 = vld [vmem:[%s1753_s8 + $0x38] sm:$0xff] }
  0x1f   : > { %1458 = vmatprep.subr.bf16.mxu0 %v1457_v20  ;;  %1539 = vmatprep.subr.bf16.mxu1 %v1457_v20  ;;  %v380_v39 = vld [vmem:[%s1753_s8 + $0x78] sm:$0xff] }
  0x22   : > { %1460 = vmatpush3.bf16.msra.mxu0 %v1457_v20  ;;  %1547 = vmatpush3.bf16.msra.mxu1 %v1457_v20 }
  0x23   : > { %1462 = vmatprep.subr.bf16.mxu0 %v1461_v21  ;;  %1540 = vmatprep.subr.bf16.mxu1 %v1461_v21 }
  0x26   : > { %1464 = vmatpush3.bf16.msra.mxu0 %v1461_v21  ;;  %1548 = vmatpush3.bf16.msra.mxu1 %v1461_v21 }
  0x27   : > { %1466 = vmatprep.subr.bf16.mxu0 %v1465_v22  ;;  %1541 = vmatprep.subr.bf16.mxu1 %v1465_v22 }
  0x2a   : > { %1468 = vmatpush3.bf16.msra.mxu0 %v1465_v22  ;;  %1549 = vmatpush3.bf16.msra.mxu1 %v1465_v22 }
  0x2b   : > { %1470 = vmatprep.subr.bf16.mxu0 %v1469_v23  ;;  %1542 = vmatprep.subr.bf16.mxu1 %v1469_v23 }
  0x2e   : > { %1472 = vmatpush3.bf16.msra.mxu0 %v1469_v23  ;;  %1550 = vmatpush3.bf16.msra.mxu1 %v1469_v23 }
  0x2f   : > { %1474 = vmatprep.subr.bf16.mxu0 %v1473_v24  ;;  %1543 = vmatprep.subr.bf16.mxu1 %v1473_v24 }
  0x32   : > { %1476 = vmatpush3.bf16.msra.mxu0 %v1473_v24  ;;  %1551 = vmatpush3.bf16.msra.mxu1 %v1473_v24 }
  0x33   : > { %1478 = vmatprep.subr.bf16.mxu0 %v1477_v25  ;;  %1544 = vmatprep.subr.bf16.mxu1 %v1477_v25 }
  0x36   : > { %1480 = vmatpush3.bf16.msra.mxu0 %v1477_v25  ;;  %1552 = vmatpush3.bf16.msra.mxu1 %v1477_v25 }
  0x39   : > { %1303 = vmatmul.mubr.f32.vlgmr.msra.gmra.mrb[0].mxu0 %v366_v26  ;;  %1315 = vmatmul.mubr.f32.vlgmr.msra.gmra.mrb[0].mxu1 %v374_v27 }
  0x3a   : > { %1305 = vmatprep.mubr.f32.mxu0 %v367_v28  ;;  %1317 = vmatprep.mubr.f32.mxu1 %v375_v29 }
  0x3d   : > { %1306 = vmatmul.mubr.f32.gmra.mrb[2].mxu0 %v368_v30  ;;  %1318 = vmatmul.mubr.f32.gmra.mrb[2].mxu1 %v376_v31 }
  0x3e   : > { %1308 = vmatprep.mubr.f32.mxu0 %v369_v32  ;;  %1320 = vmatprep.mubr.f32.mxu1 %v377_v33 }
  0x41   : > { %1309 = vmatmul.mubr.f32.gmra.mrb[4].mxu0 %v370_v34  ;;  %1321 = vmatmul.mubr.f32.gmra.mrb[4].mxu1 %v378_v35 }
  0x42   : > { %1311 = vmatprep.mubr.f32.mxu0 %v371_v36  ;;  %1323 = vmatprep.mubr.f32.mxu1 %v379_v37 }
  0x45   : > { %1312 = vmatmul.mubr.f32.gmra.mrb[6].mxu0 %v372_v38  ;;  %1324 = vmatmul.mubr.f32.gmra.mrb[6].mxu1 %v380_v39 }
 0x10c   : > { %v1304_v40 = vpop.f32.mrb[0].mxu0  ;;  %v1316_v41 = vpop.f32.mrb[0].mxu1 }
 0x10d   : > { %v447_v42 = vpop.f32.mrb[1].mxu0  ;;  %v487_v43 = vpop.f32.mrb[1].mxu1 }
 0x10e   : > { %v526_v44 = vpack.c.bf16 %v1304_v40, %v447_v42  ;;  %v530_v45 = vpack.c.bf16 %v1316_v41, %v487_v43 }
 0x110   : > { %534 = vst [vmem:[#allocation2] sm:$0xff] %v526_v44  ;;  %538 = vst [vmem:[#allocation2 + $0x20] sm:$0xff] %v530_v45  ;;  %v1307_v46 = vpop.f32.mrb[2].mxu0  ;;  %v1319_v47 = vpop.f32.mrb[2].mxu1 }
 0x111   : > { %v457_v48 = vpop.f32.mrb[3].mxu0  ;;  %v497_v49 = vpop.f32.mrb[3].mxu1 }
 0x112   : > { %v527_v50 = vpack.c.bf16 %v1307_v46, %v457_v48  ;;  %v531_v51 = vpack.c.bf16 %v1319_v47, %v497_v49 }
 0x114   : > { %535 = vst [vmem:[#allocation2 + $0x8] sm:$0xff] %v527_v50  ;;  %539 = vst [vmem:[#allocation2 + $0x28] sm:$0xff] %v531_v51  ;;  %v1310_v52 = vpop.f32.mrb[4].mxu0  ;;  %v1322_v53 = vpop.f32.mrb[4].mxu1 }
 0x115   : > { %v467_v54 = vpop.f32.mrb[5].mxu0  ;;  %v507_v55 = vpop.f32.mrb[5].mxu1 }
 0x116   : > { %v528_v56 = vpack.c.bf16 %v1310_v52, %v467_v54  ;;  %v532_v57 = vpack.c.bf16 %v1322_v53, %v507_v55 }
 0x118   : > { %536 = vst [vmem:[#allocation2 + $0x10] sm:$0xff] %v528_v56  ;;  %540 = vst [vmem:[#allocation2 + $0x30] sm:$0xff] %v532_v57  ;;  %v1313_v58 = vpop.f32.mrb[6].mxu0  ;;  %v1325_v59 = vpop.f32.mrb[6].mxu1 }
 0x119   : > { %v477_v60 = vpop.f32.mrb[7].mxu0  ;;  %v517_v61 = vpop.f32.mrb[7].mxu1 }
 0x11a   : > { %v529_v62 = vpack.c.bf16 %v1313_v58, %v477_v60  ;;  %v533_v63 = vpack.c.bf16 %v1325_v59, %v517_v61 }
 0x11c   : > { %537 = vst [vmem:[#allocation2 + $0x18] sm:$0xff] %v529_v62  ;;  %541 = vst [vmem:[#allocation2 + $0x38] sm:$0xff] %v533_v63 }
 0x11d PF: > { %p1156_p8 = scmp.le.s32.totalorder %s1658_s18, 0 }
 0x11e   : > { %v1481_v16 = vpack.c.bf16 (!%p1156_p8), %v1775_v1, %v1773_v0  ;;  %v1485_v17 = vpack.c.bf16 (!%p1156_p8), %v1779_v3, %v1777_v2  ;;  %v546_v18 = vld [vmem:[#allocation3] sm:$0xff] (!%p1156_p8)  ;;  %v1489_v20 = vpack.c.bf16 (!%p1156_p8), %v1783_v5, %v1781_v4  ;;  %v1493_v0 = vpack.c.bf16 (!%p1156_p8), %v1787_v7, %v1785_v6  ;;  %v547_v5 = vld [vmem:[#allocation3 + $0x8] sm:$0xff] (!%p1156_p8)  ;;  %v548_v7 = vld [vmem:[#allocation3 + $0x10] sm:$0xff] (!%p1156_p8) }
 0x11f   : > { %545 = sbr.rel (%p1156_p8) target bundleno = 548 (0x224), region = 52  ;;  %1358 = vmatprep.mubr.f32.mxu0 (!%p1156_p8), %v546_v18  ;;  %v554_v19 = vld [vmem:[#allocation3 + $0x40] sm:$0xff] (!%p1156_p8)  ;;  %v1497_v1 = vpack.c.bf16 (!%p1156_p8), %v1791_v9, %v1789_v8  ;;  %v1501_v2 = vpack.c.bf16 (!%p1156_p8), %v1795_v11, %v1793_v10  ;;  %v1505_v3 = vpack.c.bf16 (!%p1156_p8), %v1799_v13, %v1797_v12  ;;  %v1509_v4 = vpack.c.bf16 (!%p1156_p8), %v1803_v15, %v1801_v14  ;;  %v555_v6 = vld [vmem:[#allocation3 + $0x48] sm:$0xff] (!%p1156_p8)  ;;  %v556_v8 = vld [vmem:[#allocation3 + $0x50] sm:$0xff] (!%p1156_p8) }
 0x120   : > { %1482 = vmatprep.subr.bf16.mxu0 (!%p1156_p8), %v1481_v16  ;;  %1553 = vmatprep.subr.bf16.mxu1 (!%p1156_p8), %v1481_v16  ;;  %v549_v9 = vld [vmem:[#allocation3 + $0x18] sm:$0xff] (!%p1156_p8)  ;;  %v550_v11 = vld [vmem:[#allocation3 + $0x20] sm:$0xff] (!%p1156_p8)  ;;  %v551_v13 = vld [vmem:[#allocation3 + $0x28] sm:$0xff] (!%p1156_p8) }
 0x121   : > { %1484 = vmatpush3.bf16.msra.mxu0 (!%p1156_p8), %v1481_v16  ;;  %1561 = vmatpush3.bf16.msra.mxu1 (!%p1156_p8), %v1481_v16  ;;  %v557_v10 = vld [vmem:[#allocation3 + $0x58] sm:$0xff] (!%p1156_p8)  ;;  %v558_v12 = vld [vmem:[#allocation3 + $0x60] sm:$0xff] (!%p1156_p8)  ;;  %v559_v14 = vld [vmem:[#allocation3 + $0x68] sm:$0xff] (!%p1156_p8) }
 0x122   : > { %1486 = vmatprep.subr.bf16.mxu0 (!%p1156_p8), %v1485_v17  ;;  %1554 = vmatprep.subr.bf16.mxu1 (!%p1156_p8), %v1485_v17  ;;  %v552_v15 = vld [vmem:[#allocation3 + $0x30] sm:$0xff] (!%p1156_p8)  ;;  %v553_v22 = vld [vmem:[#allocation3 + $0x38] sm:$0xff] (!%p1156_p8) }
 0x123   : > { %1370 = vmatprep.mubr.f32.mxu1 (!%p1156_p8), %v554_v19  ;;  %v560_v21 = vld [vmem:[#allocation3 + $0x70] sm:$0xff] (!%p1156_p8)  ;;  %v561_v23 = vld [vmem:[#allocation3 + $0x78] sm:$0xff] (!%p1156_p8) }
 0x125   : > { %1488 = vmatpush3.bf16.msra.mxu0 (!%p1156_p8), %v1485_v17  ;;  %1562 = vmatpush3.bf16.msra.mxu1 (!%p1156_p8), %v1485_v17 }
 0x126   : > { %1490 = vmatprep.subr.bf16.mxu0 %v1489_v20  ;;  %1555 = vmatprep.subr.bf16.mxu1 %v1489_v20 }
 0x129   : > { %1492 = vmatpush3.bf16.msra.mxu0 %v1489_v20  ;;  %1563 = vmatpush3.bf16.msra.mxu1 %v1489_v20 }
 0x12a   : > { %1494 = vmatprep.subr.bf16.mxu0 %v1493_v0  ;;  %1556 = vmatprep.subr.bf16.mxu1 %v1493_v0 }
 0x12d   : > { %1496 = vmatpush3.bf16.msra.mxu0 %v1493_v0  ;;  %1564 = vmatpush3.bf16.msra.mxu1 %v1493_v0 }
 0x12e   : > { %1498 = vmatprep.subr.bf16.mxu0 %v1497_v1  ;;  %1557 = vmatprep.subr.bf16.mxu1 %v1497_v1 }
 0x131   : > { %1500 = vmatpush3.bf16.msra.mxu0 %v1497_v1  ;;  %1565 = vmatpush3.bf16.msra.mxu1 %v1497_v1 }
 0x132   : > { %1502 = vmatprep.subr.bf16.mxu0 %v1501_v2  ;;  %1558 = vmatprep.subr.bf16.mxu1 %v1501_v2 }
 0x135   : > { %1504 = vmatpush3.bf16.msra.mxu0 %v1501_v2  ;;  %1566 = vmatpush3.bf16.msra.mxu1 %v1501_v2 }
 0x136   : > { %1506 = vmatprep.subr.bf16.mxu0 %v1505_v3  ;;  %1559 = vmatprep.subr.bf16.mxu1 %v1505_v3 }
 0x139   : > { %1508 = vmatpush3.bf16.msra.mxu0 %v1505_v3  ;;  %1567 = vmatpush3.bf16.msra.mxu1 %v1505_v3 }
 0x13a   : > { %1510 = vmatprep.subr.bf16.mxu0 %v1509_v4  ;;  %1560 = vmatprep.subr.bf16.mxu1 %v1509_v4 }
 0x13d   : > { %1512 = vmatpush3.bf16.msra.mxu0 %v1509_v4  ;;  %1568 = vmatpush3.bf16.msra.mxu1 %v1509_v4 }
 0x140   : > { %1359 = vmatmul.mubr.f32.vlgmr.msra.gmra.mrb[0].mxu0 %v547_v5  ;;  %1371 = vmatmul.mubr.f32.vlgmr.msra.gmra.mrb[0].mxu1 %v555_v6 }
 0x141   : > { %1361 = vmatprep.mubr.f32.mxu0 %v548_v7  ;;  %1373 = vmatprep.mubr.f32.mxu1 %v556_v8 }
 0x144   : > { %1362 = vmatmul.mubr.f32.gmra.mrb[2].mxu0 %v549_v9  ;;  %1374 = vmatmul.mubr.f32.gmra.mrb[2].mxu1 %v557_v10 }
 0x145   : > { %1364 = vmatprep.mubr.f32.mxu0 %v550_v11  ;;  %1376 = vmatprep.mubr.f32.mxu1 %v558_v12 }
 0x148   : > { %1365 = vmatmul.mubr.f32.gmra.mrb[4].mxu0 %v551_v13  ;;  %1377 = vmatmul.mubr.f32.gmra.mrb[4].mxu1 %v559_v14 }
 0x149   : > { %1367 = vmatprep.mubr.f32.mxu0 %v552_v15  ;;  %1379 = vmatprep.mubr.f32.mxu1 %v560_v21 }
 0x14c   : > { %1368 = vmatmul.mubr.f32.gmra.mrb[6].mxu0 %v553_v22  ;;  %1380 = vmatmul.mubr.f32.gmra.mrb[6].mxu1 %v561_v23 }
 0x213   : > { %v1360_v24 = vpop.f32.mrb[0].mxu0  ;;  %v1372_v25 = vpop.f32.mrb[0].mxu1 }
 0x214   : > { %v628_v26 = vpop.f32.mrb[1].mxu0  ;;  %v668_v27 = vpop.f32.mrb[1].mxu1 }
 0x215   : > { %v707_v28 = vpack.c.bf16 %v1360_v24, %v628_v26  ;;  %v711_v29 = vpack.c.bf16 %v1372_v25, %v668_v27 }
 0x217   : > { %715 = vst [vmem:[#allocation2] sm:$0xff] %v707_v28  ;;  %719 = vst [vmem:[#allocation2 + $0x20] sm:$0xff] %v711_v29  ;;  %v1363_v30 = vpop.f32.mrb[2].mxu0  ;;  %v1375_v31 = vpop.f32.mrb[2].mxu1 }
 0x218   : > { %v638_v32 = vpop.f32.mrb[3].mxu0  ;;  %v678_v33 = vpop.f32.mrb[3].mxu1 }
 0x219   : > { %v708_v34 = vpack.c.bf16 %v1363_v30, %v638_v32  ;;  %v712_v35 = vpack.c.bf16 %v1375_v31, %v678_v33 }
 0x21b   : > { %716 = vst [vmem:[#allocation2 + $0x8] sm:$0xff] %v708_v34  ;;  %720 = vst [vmem:[#allocation2 + $0x28] sm:$0xff] %v712_v35  ;;  %v1366_v36 = vpop.f32.mrb[4].mxu0  ;;  %v1378_v37 = vpop.f32.mrb[4].mxu1 }
 0x21c   : > { %v648_v38 = vpop.f32.mrb[5].mxu0  ;;  %v688_v39 = vpop.f32.mrb[5].mxu1 }
 0x21d   : > { %v709_v40 = vpack.c.bf16 %v1366_v36, %v648_v38  ;;  %v713_v41 = vpack.c.bf16 %v1378_v37, %v688_v39 }
 0x21f   : > { %717 = vst [vmem:[#allocation2 + $0x10] sm:$0xff] %v709_v40  ;;  %721 = vst [vmem:[#allocation2 + $0x30] sm:$0xff] %v713_v41  ;;  %v1369_v42 = vpop.f32.mrb[6].mxu0  ;;  %v1381_v43 = vpop.f32.mrb[6].mxu1 }
 0x220   : > { %v658_v44 = vpop.f32.mrb[7].mxu0  ;;  %v698_v45 = vpop.f32.mrb[7].mxu1 }
 0x221   : > { %v710_v46 = vpack.c.bf16 %v1369_v42, %v658_v44  ;;  %v714_v47 = vpack.c.bf16 %v1381_v43, %v698_v45 }
 0x223   : > { %718 = vst [vmem:[#allocation2 + $0x18] sm:$0xff] %v710_v46  ;;  %722 = vst [vmem:[#allocation2 + $0x38] sm:$0xff] %v714_v47 }
 0x224 PF: > { %v739_v48 = vld [vmem:[#allocation2] sm:$0xff]  ;;  %v740_v49 = vld [vmem:[#allocation2 + $0x8] sm:$0xff]  ;;  %v1628_v51 = vld [vmem:[%s1748_s30] sm:$0xff]   ;;  %p1166_p9 = scmp.ge.s32.totalorder %s1658_s18, 2 }
 0x225   : > { %1382 = vmatprep.subr.bf16.mxu0 %v739_v48  ;;  %1569 = vmatprep.subr.bf16.mxu1 %v739_v48  ;;  %v1629_v52 = vld [vmem:[%s1748_s30 + $0x20] sm:$0xff]   ;;  %v743_v54 = vld [vmem:[#allocation2 + $0x20] sm:$0xff]  ;;  %v744_v55 = vld [vmem:[#allocation2 + $0x28] sm:$0xff] }
 0x226   : > { %1383 = vmatpush3.bf16.msra.mxu0 %v739_v48  ;;  %1577 = vmatpush3.bf16.msra.mxu1 %v739_v48  ;;  %v741_v50 = vld [vmem:[#allocation2 + $0x10] sm:$0xff]  ;;  %v1630_v58 = vld [vmem:[%s1748_s30 + $0x8] sm:$0xff]   ;;  %v1632_v60 = vld [vmem:[%s1748_s30 + $0x10] sm:$0xff]  }
 0x227   : > { %1384 = vmatprep.subr.bf16.mxu0 %v740_v49  ;;  %1570 = vmatprep.subr.bf16.mxu1 %v740_v49  ;;  %v745_v56 = vld [vmem:[#allocation2 + $0x30] sm:$0xff]  ;;  %v1631_v59 = vld [vmem:[%s1748_s30 + $0x28] sm:$0xff]   ;;  %v1633_v61 = vld [vmem:[%s1748_s30 + $0x30] sm:$0xff]  }
 0x228   : > { %1398 = vmatprep.mubr.bf16.mxu0 %v1628_v51  ;;  %1406 = vmatprep.mubr.bf16.mxu1 %v1629_v52  ;;  %v1634_v62 = vld [vmem:[%s1748_s30 + $0x18] sm:$0xff]   ;;  %v1157_v16 = vld [vmem:[%s335_s26] ss:$0 sm:$0xff] }
 0x229   : > { %v1635_v63 = vld [vmem:[%s1748_s30 + $0x38] sm:$0xff]  }
 0x22a   : > { %1385 = vmatpush3.bf16.msra.mxu0 %v740_v49  ;;  %1578 = vmatpush3.bf16.msra.mxu1 %v740_v49  ;;  %v742_v53 = vld [vmem:[#allocation2 + $0x18] sm:$0xff] }
 0x22b   : > { %1386 = vmatprep.subr.bf16.mxu0 %v741_v50  ;;  %1571 = vmatprep.subr.bf16.mxu1 %v741_v50  ;;  %v746_v57 = vld [vmem:[#allocation2 + $0x38] sm:$0xff] }
 0x22e   : > { %1387 = vmatpush3.bf16.msra.mxu0 %v741_v50  ;;  %1579 = vmatpush3.bf16.msra.mxu1 %v741_v50 }
 0x22f   : > { %1388 = vmatprep.subr.bf16.mxu0 %v742_v53  ;;  %1572 = vmatprep.subr.bf16.mxu1 %v742_v53 }
 0x232   : > { %1389 = vmatpush3.bf16.msra.mxu0 %v742_v53  ;;  %1580 = vmatpush3.bf16.msra.mxu1 %v742_v53 }
 0x233   : > { %1390 = vmatprep.subr.bf16.mxu0 %v743_v54  ;;  %1573 = vmatprep.subr.bf16.mxu1 %v743_v54 }
 0x236   : > { %1391 = vmatpush3.bf16.msra.mxu0 %v743_v54  ;;  %1581 = vmatpush3.bf16.msra.mxu1 %v743_v54 }
 0x237   : > { %1392 = vmatprep.subr.bf16.mxu0 %v744_v55  ;;  %1574 = vmatprep.subr.bf16.mxu1 %v744_v55 }
 0x23a   : > { %1393 = vmatpush3.bf16.msra.mxu0 %v744_v55  ;;  %1582 = vmatpush3.bf16.msra.mxu1 %v744_v55 }
 0x23b   : > { %1394 = vmatprep.subr.bf16.mxu0 %v745_v56  ;;  %1575 = vmatprep.subr.bf16.mxu1 %v745_v56 }
 0x23e   : > { %1395 = vmatpush3.bf16.msra.mxu0 %v745_v56  ;;  %1583 = vmatpush3.bf16.msra.mxu1 %v745_v56 }
 0x23f   : > { %1396 = vmatprep.subr.bf16.mxu0 %v746_v57  ;;  %1576 = vmatprep.subr.bf16.mxu1 %v746_v57 }
 0x242   : > { %1397 = vmatpush3.bf16.msra.mxu0 %v746_v57  ;;  %1584 = vmatpush3.bf16.msra.mxu1 %v746_v57 }
 0x245   : > { %1399 = vmatmul.mubr.bf16.vlgmr.msra.gmra.mrb[0].mxu0 %v1630_v58  ;;  %1407 = vmatmul.mubr.bf16.vlgmr.msra.gmra.mrb[0].mxu1 %v1631_v59 }
 0x246   : > { %1402 = vmatprep.mubr.bf16.mxu0 %v1632_v60  ;;  %1410 = vmatprep.mubr.bf16.mxu1 %v1633_v61 }
 0x24d   : > { %1403 = vmatmul.mubr.bf16.gmra.mrb[4].mxu0 %v1634_v62  ;;  %1411 = vmatmul.mubr.bf16.gmra.mrb[4].mxu1 %v1635_v63 }
 0x318   : > { %v1400_v17 = vpop.f32.mrb[0].mxu0  ;;  %v1408_v18 = vpop.f32.mrb[0].mxu1 }
 0x319   : > { %v1868_v19 = vadd.f32 %v1400_v17, %v1157_v16  ;;  %v1870_v20 = vadd.f32 %v1408_v18, %v1157_v16  ;;  %v836_v0 = vpop.f32.mrb[1].mxu0  ;;  %v868_v1 = vpop.f32.mrb[1].mxu1 }
 0x31a   : > { %v1872_v2 = vadd.f32 %v1157_v16, %v836_v0  ;;  %v1874_v3 = vadd.f32 %v1157_v16, %v868_v1  ;;  %v1401_v4 = vpop.f32.mrb[2].mxu0  ;;  %v1409_v5 = vpop.f32.mrb[2].mxu1 }
 0x31b   : > { %v1876_v6 = vadd.f32 %v1401_v4, %v1157_v16  ;;  %v1878_v7 = vadd.f32 %v1409_v5, %v1157_v16  ;;  %v839_v8 = vpop.f32.mrb[3].mxu0  ;;  %v871_v9 = vpop.f32.mrb[3].mxu1  ;;  %v906_v35 = vmax.f32 (!%p1166_p9), %v1868_v19, 0.0  ;;  %v914_v43 = vmax.f32 (!%p1166_p9), %v1870_v20, 0.0 }
 0x31c   : > { %v840_v10 = vadd.f32 %v1157_v16, %v839_v8  ;;  %v1880_v11 = vadd.f32 %v1157_v16, %v871_v9  ;;  %v904_v33 = vmax.f32 (!%p1166_p9), %v1872_v2, 0.0  ;;  %v912_v41 = vmax.f32 (!%p1166_p9), %v1874_v3, 0.0 }
 0x31d   : > { %v907_v36 = vmax.f32 (!%p1166_p9), %v1876_v6, 0.0  ;;  %923 = vst [vmem:[#allocation3 + $0x10] sm:$0xff] (!%p1166_p9), %v906_v35  ;;  %v915_v44 = vmax.f32 (!%p1166_p9), %v1878_v7, 0.0  ;;  %931 = vst [vmem:[#allocation3 + $0x50] sm:$0xff] (!%p1166_p9), %v914_v43 }
 0x31e   : > { %903 = sbr.rel (%p1166_p9) target bundleno = 809 (0x329), region = 56  ;;  %v905_v34 = vmax.f32 (!%p1166_p9), %v840_v10, 0.0  ;;  %921 = vst [vmem:[#allocation3] sm:$0xff] (!%p1166_p9), %v904_v33  ;;  %v913_v42 = vmax.f32 (!%p1166_p9), %v1880_v11, 0.0  ;;  %929 = vst [vmem:[#allocation3 + $0x40] sm:$0xff] (!%p1166_p9), %v912_v41 }
 0x31f   : > { %924 = vst [vmem:[#allocation3 + $0x18] sm:$0xff] (!%p1166_p9), %v907_v36  ;;  %932 = vst [vmem:[#allocation3 + $0x58] sm:$0xff] (!%p1166_p9), %v915_v44 }
 0x320   : > { %v1404_v12 = vpop.f32.mrb[4].mxu0  ;;  %v1412_v13 = vpop.f32.mrb[4].mxu1  ;;  %922 = vst [vmem:[#allocation3 + $0x8] sm:$0xff] (!%p1166_p9), %v905_v34  ;;  %930 = vst [vmem:[#allocation3 + $0x48] sm:$0xff] (!%p1166_p9), %v913_v42 }
 0x321   : > { %v1882_v14 = vadd.f32 %v1404_v12, %v1157_v16  ;;  %v1884_v15 = vadd.f32 %v1412_v13, %v1157_v16  ;;  %v852_v21 = vpop.f32.mrb[5].mxu0  ;;  %v884_v22 = vpop.f32.mrb[5].mxu1 }
 0x322   : > { %v853_v23 = vadd.f32 %v1157_v16, %v852_v21  ;;  %v1886_v24 = vadd.f32 %v1157_v16, %v884_v22  ;;  %v1405_v25 = vpop.f32.mrb[6].mxu0  ;;  %v1413_v26 = vpop.f32.mrb[6].mxu1 }
 0x323   : > { %v864_v27 = vadd.f32 %v1405_v25, %v1157_v16  ;;  %v1888_v28 = vadd.f32 %v1413_v26, %v1157_v16  ;;  %v855_v29 = vpop.f32.mrb[7].mxu0  ;;  %v887_v30 = vpop.f32.mrb[7].mxu1  ;;  %v910_v39 = vmax.f32 (!%p1166_p9), %v1882_v14, 0.0  ;;  %v918_v47 = vmax.f32 (!%p1166_p9), %v1884_v15, 0.0 }
 0x324   : > { %v856_v31 = vadd.f32 %v1157_v16, %v855_v29  ;;  %v888_v32 = vadd.f32 %v1157_v16, %v887_v30  ;;  %v908_v37 = vmax.f32 (!%p1166_p9), %v853_v23, 0.0  ;;  %v916_v45 = vmax.f32 (!%p1166_p9), %v1886_v24, 0.0 }
 0x325   : > { %v911_v40 = vmax.f32 %v864_v27, 0.0  ;;  %927 = vst [vmem:[#allocation3 + $0x30] sm:$0xff] %v910_v39  ;;  %v919_v48 = vmax.f32 %v1888_v28, 0.0  ;;  %935 = vst [vmem:[#allocation3 + $0x70] sm:$0xff] %v918_v47 }
 0x326   : > { %v909_v38 = vmax.f32 %v856_v31, 0.0  ;;  %925 = vst [vmem:[#allocation3 + $0x20] sm:$0xff] %v908_v37  ;;  %v917_v46 = vmax.f32 %v888_v32, 0.0  ;;  %933 = vst [vmem:[#allocation3 + $0x60] sm:$0xff] %v916_v45 }
 0x327   : > { %928 = vst [vmem:[#allocation3 + $0x38] sm:$0xff] %v911_v40  ;;  %936 = vst [vmem:[#allocation3 + $0x78] sm:$0xff] %v919_v48 }
 0x328   : > { %926 = vst [vmem:[#allocation3 + $0x28] sm:$0xff] %v909_v38  ;;  %934 = vst [vmem:[#allocation3 + $0x68] sm:$0xff] %v917_v46 }
 0x329 PF: > { %p1167_p10 = scmp.ne.s32.totalorder %s1658_s18, 2 }
 0x32a   : > { %v1514_v49 = vpack.c.bf16 (!%p1167_p10), %v840_v10, %v1872_v2  ;;  %v1676_v50 = vmov (!%p1167_p10), 0.0|0.0   ;;  %v1517_v51 = vpack.c.bf16 (!%p1167_p10), %v1876_v6, %v1868_v19  ;;  %vm1677_vm0 = vmmov (!%p1167_p10), 0   ;;  %v946_v59 = vld [vmem:[%s1759_s13] sm:$0xff] (!%p1167_p10) }
 0x32b   : > { %940 = sbr.rel (%p1167_p10) target bundleno = 1056 (0x420), region = 60  ;;  %1513 = vmatprep.subr.bf16.mxu0 (!%p1167_p10), %v1676_v50  ;;  %v1678_v52 = vmov (!%p1167_p10), 0.0   ;;  %v1520_v53 = vpack.c.bf16 (!%p1167_p10), %v856_v31, %v853_v23  ;;  %v1523_v54 = vpack.c.bf16 (!%p1167_p10), %v864_v27, %v1882_v14  ;;  %v1526_v55 = vpack.c.bf16 (!%p1167_p10), %v1880_v11, %v1874_v3 }
 0x32c   : > { %1515 = vmatpush3.bf16.msra.mxu0 (!%p1167_p10), %v1514_v49  ;;  %1446 = vmatprep.mubr.msk.f32.mxu0 (!%p1167_p10), %vm1677_vm0, %v1678_v52  ;;  %v1529_v56 = vpack.c.bf16 (!%p1167_p10), %v1878_v7, %v1870_v20  ;;  %v1532_v57 = vpack.c.bf16 (!%p1167_p10), %v888_v32, %v1886_v24  ;;  %v1535_v58 = vpack.c.bf16 (!%p1167_p10), %v1888_v28, %v1884_v15 }
 0x32d   : > { %1516 = vmatprep.subr.bf16.mxu0 (!%p1167_p10), %v1676_v50 }
 0x330   : > { %1518 = vmatpush3.bf16.msra.mxu0 (!%p1167_p10), %v1517_v51 }
 0x331   : > { %1519 = vmatprep.subr.bf16.mxu0 (!%p1167_p10), %v1676_v50 }
 0x334   : > { %1521 = vmatpush3.bf16.msra.mxu0 %v1520_v53 }
 0x335   : > { %1522 = vmatprep.subr.bf16.mxu0 %v1676_v50 }
 0x338   : > { %1524 = vmatpush3.bf16.msra.mxu0 %v1523_v54 }
 0x339   : > { %1525 = vmatprep.subr.bf16.mxu0 %v1676_v50 }
 0x33c   : > { %1527 = vmatpush3.bf16.msra.mxu0 %v1526_v55 }
 0x33d   : > { %1528 = vmatprep.subr.bf16.mxu0 %v1676_v50 }
 0x340   : > { %1530 = vmatpush3.bf16.msra.mxu0 %v1529_v56 }
 0x341   : > { %1531 = vmatprep.subr.bf16.mxu0 %v1676_v50 }
 0x344   : > { %1533 = vmatpush3.bf16.msra.mxu0 %v1532_v57 }
 0x345   : > { %1534 = vmatprep.subr.bf16.mxu0 %v1676_v50 }
 0x348   : > { %1536 = vmatpush3.bf16.msra.mxu0 %v1535_v58 }
 0x34b   : > { %1447 = vmatmul.mubr.f32.vlgmr.msra.gmra.mrb[0].mxu0 %v946_v59 }
 0x41e   : > { %v1013_v60 = vpop.f32.mrb[0].mxu0 }
 0x41f   : > { %v1448_v61 = vpop.f32.mrb[1].mxu0  ;;  %1018 = vst [vmem:[%s1771_s27] sm:$0xff] %v1013_v60 }
 0x420 PF: > { %s15_s22 = sadd.s32 1, %s1674_s22   ;;  %s1939_s18 = smov %s1666_s20 }
 0x421   : > { %p12_p11 = scmp.ge.s32.totalorder %s15_s22, 8   ;;  %s1940_s19 = smov %s1670_s21 }
 0x422   : > { %s1941_s20 = smov %s1944_s23  ;;  %s1942_s21 = smov %s1948_s24 }
 0x423   :  { %14 = sbr.rel (!%p12_p11) target bundleno = 3 (0x3), region = 107 }

</bundles_post_ra>
